<compile_context>
chip_gen: v6e
topology: v6e:2x2x1
jax: 0.10.0
libtpu: 0.0.40
codegen_flags: <defaults>
</compile_context>

<pallas_src>
import functools

import jax
import jax.numpy as jnp
from jax.experimental import pallas as pl
from jax.experimental.pallas import tpu as pltpu


def _round_up(x, m):
    return (x + m - 1) // m * m


def _resident_spec(shape):
    """Constant index_map -> block stays resident in VMEM across all grid steps.
    Single-buffered when the installed JAX supports pipeline_mode (no pointless
    second buffer / duplicate DMA for never-changing blocks)."""
    index_map = lambda i: (0,) * len(shape)
    try:
        return pl.BlockSpec(shape, index_map, pipeline_mode=pl.Buffered(1))
    except (AttributeError, TypeError):
        return pl.BlockSpec(shape, index_map)


def mlp_kernel(x_ref, w1_ref, b1_ref, w2_ref, b2_ref, w3_ref, b3_ref, o_ref):
    # Cast the streamed x tile to the weight dtype *inside* the kernel (bf16 path);
    # no-op on the f32 path or if x already arrives in bf16.
    x = x_ref[...].astype(w1_ref.dtype)
    # hidden layer 1: ReLU(x @ W1 + b1)   (MXU matmul, f32 accumulation, f32 bias)
    h1 = jnp.dot(x, w1_ref[...], preferred_element_type=jnp.float32)
    h1 = jnp.maximum(h1 + b1_ref[...], 0.0)
    # hidden layer 2: ReLU(h1 @ W2 + b2)
    h2 = jnp.dot(h1.astype(w2_ref.dtype), w2_ref[...],
                 preferred_element_type=jnp.float32)
    h2 = jnp.maximum(h2 + b2_ref[...], 0.0)
    # output layer (no activation); narrow (nb_classes-wide) store
    out = jnp.dot(h2.astype(w3_ref.dtype), w3_ref[...],
                  preferred_element_type=jnp.float32)
    o_ref[...] = (out + b3_ref[...]).astype(o_ref.dtype)


@functools.partial(jax.jit, static_argnames=("use_bf16",))
def simple_mlp_forward(x_nchw, params, use_bf16=True):
    """x_nchw: (B, C, H, W). Returns logits (B, nb_classes) float32."""
    w1, b1, w2, b2, w3, b3 = params
    B = x_nchw.shape[0]
    x = x_nchw.reshape(B, -1)          # same flatten order as torch .view(B, -1)
    D = x.shape[1]
    H1 = w1.shape[1]
    H2 = w2.shape[1]
    NC = w3.shape[1]

    if use_bf16:
        # One-time ~0.5 MB cast of the resident weights. x is NOT cast here (the
        # wrapper cast would add a full extra HBM pass over the dominant stream);
        # the kernel casts each tile in VMEM. Biases stay f32.
        w1 = w1.astype(jnp.bfloat16)
        w2 = w2.astype(jnp.bfloat16)
        w3 = w3.astype(jnp.bfloat16)

    # --- batch tiling: no padding, ragged last block is write-masked ---
    TB_CAP = 1024                                  # ~86% of HBM roofline, ~8 MiB VMEM
    if B <= 2 * TB_CAP:
        # aim for >= 2 grid steps (v7x dual-TensorCore balance), rows multiple of 8
        TB = max(8, _round_up(pl.cdiv(B, 2), 8))
    else:
        TB = TB_CAP
    grid = (pl.cdiv(B, TB),)

    x_spec = pl.BlockSpec((TB, D), lambda i: (i, 0))
    o_spec = pl.BlockSpec((TB, NC), lambda i: (i, 0))   # last dim == full array dim

    w_isize = jnp.dtype(w1.dtype).itemsize
    x_isize = jnp.dtype(x.dtype).itemsize
    flops = 2 * B * (D * H1 + H1 * H2 + H2 * NC)
    bytes_accessed = (
        B * D * x_isize                                    # x stream
        + (D * H1 + H1 * H2 + H2 * NC) * w_isize           # weights (loaded once)
        + (H1 + H2 + NC) * 4                               # biases (f32)
        + B * NC * 4                                       # output (narrow)
    )

    out = pl.pallas_call(
        mlp_kernel,
        out_shape=jax.ShapeDtypeStruct((B, NC), jnp.float32),
        grid=grid,
        in_specs=[
            x_spec,
            _resident_spec((D, H1)), _resident_spec((1, H1)),
            _resident_spec((H1, H2)), _resident_spec((1, H2)),
            _resident_spec((H2, NC)), _resident_spec((1, NC)),
        ],
        out_specs=o_spec,
        compiler_params=pltpu.CompilerParams(
            dimension_semantics=("parallel",),
        ),
        cost_estimate=pl.CostEstimate(
            flops=flops, transcendentals=0, bytes_accessed=bytes_accessed),
    )(x, w1, b1, w2, b2, w3, b3)

    return out


def init_params(key, input_size, hidden=(128, 128), nb_classes=10):
    """Deterministic init mimicking PyTorch nn.Linear default U(-1/sqrt(fan_in), +)."""
    dims = [input_size, hidden[0], hidden[1], nb_classes]
    params = []
    for i in range(3):
        fan_in, fan_out = dims[i], dims[i + 1]
        key, kw, kb = jax.random.split(key, 3)
        bound = 1.0 / jnp.sqrt(fan_in)
        # stored as (in, out) so the kernel does x @ W
        w = jax.random.uniform(kw, (fan_in, fan_out), jnp.float32, -bound, bound)
        b = jax.random.uniform(kb, (1, fan_out), jnp.float32, -bound, bound)
        params += [w, b]
    return tuple(params)


def reference_forward(x_nchw, params):
    w1, b1, w2, b2, w3, b3 = params
    x = x_nchw.reshape(x_nchw.shape[0], -1)
    h1 = jax.nn.relu(x @ w1 + b1)
    h2 = jax.nn.relu(h1 @ w2 + b2)
    return h2 @ w3 + b3


if __name__ == "__main__":
    # SimpleMLP(img_size=16, img_mode='RGB', nb_classes=10)
    img_size, in_channels, nb_classes = 16, 3, 10
    input_size = img_size * img_size * in_channels  # 768

    key = jax.random.PRNGKey(0)
    key, kx = jax.random.split(key)
    x = jax.random.normal(kx, (2, in_channels, img_size, img_size), jnp.float32)

    params = init_params(key, input_size, hidden=(128, 128), nb_classes=nb_classes)
    ref = reference_forward(x, params)

    # f32 path: tight numerical check (also exercises block_shape > array rows)
    out_f32 = jax.block_until_ready(simple_mlp_forward(x, params, use_bf16=False))
    assert out_f32.shape == (2, nb_classes)
    assert jnp.allclose(out_f32, ref, atol=1e-4, rtol=1e-4)

    # default path: bf16 MXU inputs, f32 accumulation -> looser tolerance
    out = jax.block_until_ready(simple_mlp_forward(x, params))
    assert out.shape == (2, nb_classes)
    assert jnp.allclose(out, ref, atol=3e-2, rtol=3e-2)

    # non-divisible batch that actually iterates the grid (ragged last block)
    key, kx2 = jax.random.split(key)
    x_big = jax.random.normal(kx2, (1030, in_channels, img_size, img_size), jnp.float32)
    ref_big = reference_forward(x_big, params)

    out_big_f32 = jax.block_until_ready(simple_mlp_forward(x_big, params, use_bf16=False))
    assert out_big_f32.shape == (1030, nb_classes)
    assert jnp.allclose(out_big_f32, ref_big, atol=1e-3, rtol=1e-3)

    out_big = jax.block_until_ready(simple_mlp_forward(x_big, params))
    assert out_big.shape == (1030, nb_classes)
    assert jnp.allclose(out_big, ref_big, atol=5e-2, rtol=5e-2)

    print("KERNEL_OK")
</pallas_src>

<mosaic_0001>
module attributes {stable_mosaic.version = 11 : i64} {
  func.func @mlp_kernel(%arg0: i32, %arg1: memref<8x768xf32, #tpu.memory_space<vmem>>, %arg2: memref<768x128xf32, #tpu.memory_space<vmem>>, %arg3: memref<1x128xf32, #tpu.memory_space<vmem>>, %arg4: memref<128x128xf32, #tpu.memory_space<vmem>>, %arg5: memref<1x128xf32, #tpu.memory_space<vmem>>, %arg6: memref<128x10xf32, #tpu.memory_space<vmem>>, %arg7: memref<1x10xf32, #tpu.memory_space<vmem>>, %arg8: memref<8x10xf32, #tpu.memory_space<vmem>>) attributes {dimension_semantics = [#tpu.dimension_semantics<parallel>], iteration_bounds = array<i64: 1>, scalar_prefetch = 0 : i64, scratch_operands = 0 : i64, tpu.core_type = #tpu.core_type<tc>, window_params = [{transform_indices = @transform_0, window_bounds = array<i64: 8, 768>}, {pipeline_mode = #tpu.pipeline_mode<synchronous>, transform_indices = @transform_1, window_bounds = array<i64: 768, 128>}, {pipeline_mode = #tpu.pipeline_mode<synchronous>, transform_indices = @transform_2, window_bounds = array<i64: 1, 128>}, {pipeline_mode = #tpu.pipeline_mode<synchronous>, transform_indices = @transform_3, window_bounds = array<i64: 128, 128>}, {pipeline_mode = #tpu.pipeline_mode<synchronous>, transform_indices = @transform_4, window_bounds = array<i64: 1, 128>}, {pipeline_mode = #tpu.pipeline_mode<synchronous>, transform_indices = @transform_5, window_bounds = array<i64: 128, 10>}, {pipeline_mode = #tpu.pipeline_mode<synchronous>, transform_indices = @transform_6, window_bounds = array<i64: 1, 10>}, {transform_indices = @transform_7, window_bounds = array<i64: 8, 10>}]} {
    %c0 = arith.constant 0 : index
    %c0_0 = arith.constant 0 : index
    %0 = vector.load %arg1[%c0, %c0_0] : memref<8x768xf32, #tpu.memory_space<vmem>>, vector<8x768xf32>
    %c0_1 = arith.constant 0 : index
    %c0_2 = arith.constant 0 : index
    %1 = vector.load %arg2[%c0_1, %c0_2] : memref<768x128xf32, #tpu.memory_space<vmem>>, vector<768x128xf32>
    %cst = arith.constant dense<0.000000e+00> : vector<8x128xf32>
    %2 = tpu.matmul %0, %1, %cst {dimension_numbers = #tpu.dot_dimension_numbers<[1], [0], [0], [1], [0, 0, 1, 1], [], []>} : vector<8x768xf32>, vector<768x128xf32>, vector<8x128xf32> -> vector<8x128xf32>
    %c0_3 = arith.constant 0 : index
    %c0_4 = arith.constant 0 : index
    %3 = vector.load %arg3[%c0_3, %c0_4] : memref<1x128xf32, #tpu.memory_space<vmem>>, vector<1x128xf32>
    %4 = vector.broadcast %3 : vector<1x128xf32> to vector<8x128xf32>
    %5 = arith.addf %2, %4 : vector<8x128xf32>
    %cst_5 = arith.constant 0.000000e+00 : f32
    %6 = vector.broadcast %cst_5 : f32 to vector<8x128xf32>
    %7 = arith.maximumf %5, %6 : vector<8x128xf32>
    %c0_6 = arith.constant 0 : index
    %c0_7 = arith.constant 0 : index
    %8 = vector.load %arg4[%c0_6, %c0_7] : memref<128x128xf32, #tpu.memory_space<vmem>>, vector<128x128xf32>
    %cst_8 = arith.constant dense<0.000000e+00> : vector<8x128xf32>
    %9 = tpu.matmul %7, %8, %cst_8 {dimension_numbers = #tpu.dot_dimension_numbers<[1], [0], [0], [1], [0, 0, 1, 1], [], []>} : vector<8x128xf32>, vector<128x128xf32>, vector<8x128xf32> -> vector<8x128xf32>
    %c0_9 = arith.constant 0 : index
    %c0_10 = arith.constant 0 : index
    %10 = vector.load %arg5[%c0_9, %c0_10] : memref<1x128xf32, #tpu.memory_space<vmem>>, vector<1x128xf32>
    %11 = vector.broadcast %10 : vector<1x128xf32> to vector<8x128xf32>
    %12 = arith.addf %9, %11 : vector<8x128xf32>
    %cst_11 = arith.constant 0.000000e+00 : f32
    %13 = vector.broadcast %cst_11 : f32 to vector<8x128xf32>
    %14 = arith.maximumf %12, %13 : vector<8x128xf32>
    %c0_12 = arith.constant 0 : index
    %c0_13 = arith.constant 0 : index
    %15 = vector.load %arg6[%c0_12, %c0_13] : memref<128x10xf32, #tpu.memory_space<vmem>>, vector<128x10xf32>
    %cst_14 = arith.constant dense<0.000000e+00> : vector<8x10xf32>
    %16 = tpu.matmul %14, %15, %cst_14 {dimension_numbers = #tpu.dot_dimension_numbers<[1], [0], [0], [1], [0, 0, 1, 1], [], []>} : vector<8x128xf32>, vector<128x10xf32>, vector<8x10xf32> -> vector<8x10xf32>
    %c0_15 = arith.constant 0 : index
    %c0_16 = arith.constant 0 : index
    %17 = vector.load %arg7[%c0_15, %c0_16] : memref<1x10xf32, #tpu.memory_space<vmem>>, vector<1x10xf32>
    %18 = vector.broadcast %17 : vector<1x10xf32> to vector<8x10xf32>
    %19 = arith.addf %16, %18 : vector<8x10xf32>
    %c0_17 = arith.constant 0 : index
    %c0_18 = arith.constant 0 : index
    %20 = vector.load %arg8[%c0_17, %c0_18] : memref<8x10xf32, #tpu.memory_space<vmem>>, vector<8x10xf32>
    tpu.vector_store %arg8[%c0_17, %c0_18], %19 {strides = array<i32>} : memref<8x10xf32, #tpu.memory_space<vmem>>, vector<8x10xf32>,
    return
  }
  func.func @transform_0(%arg0: i32) -> (i32, i32) {
    %c0_i32 = arith.constant 0 : i32
    %c0_i32_0 = arith.constant 0 : i32
    return %arg0, %c0_i32 : i32, i32
  }
  func.func @transform_1(%arg0: i32) -> (i32, i32) {
    %c0_i32 = arith.constant 0 : i32
    %c0_i32_0 = arith.constant 0 : i32
    %c0_i32_1 = arith.constant 0 : i32
    return %c0_i32, %c0_i32_0 : i32, i32
  }
  func.func @transform_2(%arg0: i32) -> (i32, i32) {
    %c0_i32 = arith.constant 0 : i32
    %c0_i32_0 = arith.constant 0 : i32
    %c0_i32_1 = arith.constant 0 : i32
    return %c0_i32, %c0_i32_0 : i32, i32
  }
  func.func @transform_3(%arg0: i32) -> (i32, i32) {
    %c0_i32 = arith.constant 0 : i32
    %c0_i32_0 = arith.constant 0 : i32
    %c0_i32_1 = arith.constant 0 : i32
    return %c0_i32, %c0_i32_0 : i32, i32
  }
  func.func @transform_4(%arg0: i32) -> (i32, i32) {
    %c0_i32 = arith.constant 0 : i32
    %c0_i32_0 = arith.constant 0 : i32
    %c0_i32_1 = arith.constant 0 : i32
    return %c0_i32, %c0_i32_0 : i32, i32
  }
  func.func @transform_5(%arg0: i32) -> (i32, i32) {
    %c0_i32 = arith.constant 0 : i32
    %c0_i32_0 = arith.constant 0 : i32
    %c0_i32_1 = arith.constant 0 : i32
    return %c0_i32, %c0_i32_0 : i32, i32
  }
  func.func @transform_6(%arg0: i32) -> (i32, i32) {
    %c0_i32 = arith.constant 0 : i32
    %c0_i32_0 = arith.constant 0 : i32
    %c0_i32_1 = arith.constant 0 : i32
    return %c0_i32, %c0_i32_0 : i32, i32
  }
  func.func @transform_7(%arg0: i32) -> (i32, i32) {
    %c0_i32 = arith.constant 0 : i32
    %c0_i32_0 = arith.constant 0 : i32
    return %arg0, %c0_i32 : i32, i32
  }
}

</mosaic_0001>

<bundles_post_ra>
// kernel: simple_mlp_forward.1
= control target key start
LH: loop header
LB: loop body
LE: loop exit
PB: predicated region body
PF: predicated region fallthrough
CT: control target
= control target key end

     0   :  { %12 = vsyncpa [#allocation3], 0  ;;  %s1130_s0 = inlined_call_operand.vmem [shape: f32[2,768], index: 0, kind: input, shape index: {}]   ;;  %s1131_s1 = inlined_call_operand.hbm [shape: f32[768,128], index: 1, kind: input, shape index: {}]   ;;  %s1132_s2 = inlined_call_operand.vmem [shape: f32[1,128], index: 2, kind: input, shape index: {}]   ;;  %s1133_s3 = inlined_call_operand.vmem [shape: f32[128,128], index: 3, kind: input, shape index: {}]   ;;  %s1134_s4 = inlined_call_operand.vmem [shape: f32[1,128], index: 4, kind: input, shape index: {}]   ;;  %s1135_s5 = inlined_call_operand.vmem [shape: f32[128,10], index: 5, kind: input, shape index: {}]   ;;  %s1136_s6 = inlined_call_operand.vmem [shape: f32[1,10], index: 6, kind: input, shape index: {}]   ;;  %s1137_s7 = inlined_call_operand.hbm [shape: f32[2,10], index: 7, kind: output, shape index: {}]  }
   0x1   :  { %13 = vsyncpa [#allocation4], 0  ;;  %s910_s24 = smov [#allocation2]  }
   0x2   :  { %s21_s25 = sshll.u32 %s910_s24, 4  ;;  %s22_s25 = int_to_ptr.vmem [resolvable:$true] %s21_s25 }
   0x3   :  { %s874_s26 = scalar_lea.vmem %s22_s25, 12288  ;;  %p879_p1 = scmp.lt.s32.totalorder %s22_s25, %s22_s25 }
   0x4   :  { %p875_p0 = scmp.ne.s32.totalorder %s22_s25, %s874_s26  ;;  %p880_p2 = scmp.lt.s32.totalorder %s874_s26, %s874_s26 }
   0x6   :  { %p881_p3 = por %p880_p2, %p879_p1 }
   0x8   :  { %p882_p4 = pnand %p881_p3, %p875_p0 }
   0xa   :  { %885 = shalt.err (!%p882_p4)
}
   0xb   :  { %s911_s27 = smov 128   ;;  %s912_s28 = smov 8  }
   0xc   :  { %27 = dma.hbm_to_vmem [thread:$0]  %s1131_s1, 12288, %s22_s25, [#allocation3], %s911_s27, %s911_s27, %s912_s28  }
   0xd   :  { %906 = dma.done.wait [#allocation3], 12288  }
   0xe   :  { %907 = vsyncadd [#allocation3], 4294955008  ;;  %v80_v0 = vld [vmem:[#allocation2 + $0xf8] sm:$0xff]  ;;  %v79_v2 = vld [vmem:[#allocation2 + $0xf0] sm:$0xff]  ;;  %v913_v27 = vmov 1983009808   ;;  %v167_v29 = vlaneseq }
   0xf   :  { %v64_v1 = vld [vmem:[#allocation2 + $0x78] sm:$0xff]  ;;  %640 = vmatprep.subr.mxu0 %v80_v0  ;;  %v63_v4 = vld [vmem:[#allocation2 + $0x70] sm:$0xff]  ;;  %v78_v6 = vld [vmem:[#allocation2 + $0xe8] sm:$0xff]  ;;  %v165_v28 = vunpack.c.l.s4 %v913_v27  ;;  %vm915_vm0 = vmmov 0   ;;  %vm618_vm1 = vcmask 80896  }
  0x10   :  { %v112_v3 = vld [vmem:[#allocation2 + $0x1f8] sm:$0xff]  ;;  %641 = vmatpush3.msra.mxu0 %v64_v1  ;;  %v111_v7 = vld [vmem:[#allocation2 + $0x1f0] sm:$0xff]  ;;  %v62_v8 = vld [vmem:[#allocation2 + $0x68] sm:$0xff]  ;;  %v168_v39 = vshrl.u32 %v167_v29, 7 }
  0x11   :  { %v96_v5 = vld [vmem:[#allocation2 + $0x178] sm:$0xff]  ;;  %675 = vmatprep.subr.mxu1 %v112_v3  ;;  %642 = vmatprep.subr.mxu0 %v79_v2  ;;  %v95_v9 = vld [vmem:[#allocation2 + $0x170] sm:$0xff]  ;;  %v110_v10 = vld [vmem:[#allocation2 + $0x1e8] sm:$0xff]  ;;  %v166_v38 = vunpack.c.0.s8 %v165_v28 }
  0x12   :  { %676 = vmatpush3.msra.mxu1 %v96_v5  ;;  %643 = vmatpush3.msra.mxu0 %v63_v4  ;;  %v77_v11 = vld [vmem:[#allocation2 + $0xe0] sm:$0xff]  ;;  %v94_v12 = vld [vmem:[#allocation2 + $0x168] sm:$0xff]  ;;  %v76_v15 = vld [vmem:[#allocation2 + $0xd8] sm:$0xff] }
  0x13   :  { %677 = vmatprep.subr.mxu1 %v111_v7  ;;  %644 = vmatprep.subr.mxu0 %v78_v6  ;;  %v61_v13 = vld [vmem:[#allocation2 + $0x60] sm:$0xff]  ;;  %v60_v17 = vld [vmem:[#allocation2 + $0x58] sm:$0xff]  ;;  %v75_v19 = vld [vmem:[#allocation2 + $0xd0] sm:$0xff]  ;;  %v962_v51 = vsub.s32 %v166_v38, %v168_v39 }
  0x14   :  { %678 = vmatpush3.msra.mxu1 %v95_v9  ;;  %v109_v14 = vld [vmem:[#allocation2 + $0x1e0] sm:$0xff]  ;;  %645 = vmatpush3.msra.mxu0 %v62_v8  ;;  %v108_v18 = vld [vmem:[#allocation2 + $0x1d8] sm:$0xff]  ;;  %v59_v21 = vld [vmem:[#allocation2 + $0x50] sm:$0xff] }
  0x15   :  { %679 = vmatprep.subr.mxu1 %v110_v10  ;;  %v93_v16 = vld [vmem:[#allocation2 + $0x160] sm:$0xff]  ;;  %646 = vmatprep.subr.mxu0 %v77_v11  ;;  %v92_v20 = vld [vmem:[#allocation2 + $0x158] sm:$0xff]  ;;  %v107_v22 = vld [vmem:[#allocation2 + $0x1d0] sm:$0xff] }
  0x16   :  { %680 = vmatpush3.msra.mxu1 %v94_v12  ;;  %647 = vmatpush3.msra.mxu0 %v61_v13  ;;  %v74_v23 = vld [vmem:[#allocation2 + $0xc8] sm:$0xff]  ;;  %v91_v24 = vld [vmem:[#allocation2 + $0x150] sm:$0xff]  ;;  %v73_v30 = vld [vmem:[#allocation2 + $0xc0] sm:$0xff] }
  0x17   :  { %681 = vmatprep.subr.mxu1 %v109_v14  ;;  %648 = vmatprep.subr.mxu0 %v76_v15  ;;  %v58_v25 = vld [vmem:[#allocation2 + $0x48] sm:$0xff]  ;;  %v57_v32 = vld [vmem:[#allocation2 + $0x40] sm:$0xff]  ;;  %v72_v34 = vld [vmem:[#allocation2 + $0xb8] sm:$0xff] }
  0x18   :  { %682 = vmatpush3.msra.mxu1 %v93_v16  ;;  %649 = vmatpush3.msra.mxu0 %v60_v17  ;;  %v106_v26 = vld [vmem:[#allocation2 + $0x1c8] sm:$0xff]  ;;  %v105_v33 = vld [vmem:[#allocation2 + $0x1c0] sm:$0xff]  ;;  %v56_v36 = vld [vmem:[#allocation2 + $0x38] sm:$0xff] }
  0x19   :  { %683 = vmatprep.subr.mxu1 %v108_v18  ;;  %650 = vmatprep.subr.mxu0 %v75_v19  ;;  %v90_v31 = vld [vmem:[#allocation2 + $0x148] sm:$0xff]  ;;  %v89_v35 = vld [vmem:[#allocation2 + $0x140] sm:$0xff]  ;;  %v104_v37 = vld [vmem:[#allocation2 + $0x1b8] sm:$0xff] }
  0x1a   :  { %684 = vmatpush3.msra.mxu1 %v92_v20  ;;  %651 = vmatpush3.msra.mxu0 %v59_v21  ;;  %v71_v40 = vld [vmem:[#allocation2 + $0xb0] sm:$0xff]  ;;  %v88_v41 = vld [vmem:[#allocation2 + $0x138] sm:$0xff]  ;;  %v70_v43 = vld [vmem:[#allocation2 + $0xa8] sm:$0xff] }
  0x1b   :  { %685 = vmatprep.subr.mxu1 %v107_v22  ;;  %652 = vmatprep.subr.mxu0 %v74_v23  ;;  %v55_v42 = vld [vmem:[#allocation2 + $0x30] sm:$0xff]  ;;  %v54_v45 = vld [vmem:[#allocation2 + $0x28] sm:$0xff]  ;;  %v69_v47 = vld [vmem:[#allocation2 + $0xa0] sm:$0xff] }
  0x1c   :  { %686 = vmatpush3.msra.mxu1 %v91_v24  ;;  %653 = vmatpush3.msra.mxu0 %v58_v25  ;;  %v103_v44 = vld [vmem:[#allocation2 + $0x1b0] sm:$0xff]  ;;  %v102_v48 = vld [vmem:[#allocation2 + $0x1a8] sm:$0xff]  ;;  %v53_v49 = vld [vmem:[#allocation2 + $0x20] sm:$0xff] }
  0x1d   :  { %687 = vmatprep.subr.mxu1 %v106_v26  ;;  %654 = vmatprep.subr.mxu0 %v73_v30  ;;  %v87_v46 = vld [vmem:[#allocation2 + $0x130] sm:$0xff]  ;;  %v86_v50 = vld [vmem:[#allocation2 + $0x128] sm:$0xff]  ;;  %v101_v52 = vld [vmem:[#allocation2 + $0x1a0] sm:$0xff] }
  0x1e   :  { %688 = vmatpush3.msra.mxu1 %v90_v31  ;;  %655 = vmatpush3.msra.mxu0 %v57_v32  ;;  %v858_v53 = vld [vmem:[%s1130_s0] ss:$12 sps:$4 sm:$0xff]   ;;  %v68_v54 = vld [vmem:[#allocation2 + $0x98] sm:$0xff]  ;;  %v862_v60 = vld [vmem:[%s1130_s0 + $0x4] ss:$12 sps:$4 sm:$0xff]  }
  0x1f   :  { %689 = vmatprep.subr.mxu1 %v105_v33  ;;  %656 = vmatprep.subr.mxu0 %v72_v34  ;;  %v85_v55 = vld [vmem:[#allocation2 + $0x120] sm:$0xff]  ;;  %v52_v57 = vld [vmem:[#allocation2 + $0x18] sm:$0xff]  ;;  %v170_v59 = vrot.slane %v858_v53, %v962_v51  ;;  %v67_v61 = vld [vmem:[#allocation2 + $0x90] sm:$0xff]  ;;  %v177_v8 = vrot.slane %v862_v60, %v962_v51 }
  0x20   :  { %690 = vmatpush3.msra.mxu1 %v89_v35  ;;  %657 = vmatpush3.msra.mxu0 %v56_v36  ;;  %v860_v56 = vld [vmem:[%s1130_s0 + $0x18] ss:$12 sps:$4 sm:$0xff]   ;;  %v863_v0 = vld [vmem:[%s1130_s0 + $0x1c] ss:$12 sps:$4 sm:$0xff]   ;;  %v51_v1 = vld [vmem:[#allocation2 + $0x10] sm:$0xff] }
  0x21   :  { %691 = vmatprep.subr.mxu1 %v104_v37  ;;  %658 = vmatprep.subr.mxu0 %v71_v40  ;;  %v100_v58 = vld [vmem:[#allocation2 + $0x198] sm:$0xff]  ;;  %v184_v63 = vrot.slane %v860_v56, %v962_v51  ;;  %v99_v2 = vld [vmem:[#allocation2 + $0x190] sm:$0xff]  ;;  %v66_v3 = vld [vmem:[#allocation2 + $0x88] sm:$0xff]  ;;  %v191_v9 = vrot.slane %v863_v0, %v962_v51 }
  0x22   :  { %692 = vmatpush3.msra.mxu1 %v88_v41  ;;  %659 = vmatpush3.msra.mxu0 %v55_v42  ;;  %v84_v62 = vld [vmem:[#allocation2 + $0x118] sm:$0xff]  ;;  %v83_v4 = vld [vmem:[#allocation2 + $0x110] sm:$0xff]  ;;  %v50_v5 = vld [vmem:[#allocation2 + $0x8] sm:$0xff] }
  0x23   :  { %693 = vmatprep.subr.mxu1 %v103_v44  ;;  %660 = vmatprep.subr.mxu0 %v70_v43  ;;  %v98_v6 = vld [vmem:[#allocation2 + $0x188] sm:$0xff]  ;;  %v193_v7 = vcombine.high %v170_v59, %v184_v63  ;;  %v65_v10 = vld [vmem:[#allocation2 + $0x80] sm:$0xff]  ;;  %v192_v13 = vcombine.low %v170_v59, %v184_v63  ;;  %v144_v15 = vld [vmem:[#allocation2 + $0x2f8] sm:$0xff]  ;;  %v195_v17 = vcombine.high %v177_v8, %v191_v9 }
  0x24   :  { %694 = vmatpush3.msra.mxu1 %v87_v46  ;;  %661 = vmatpush3.msra.mxu0 %v54_v45  ;;  %v49_v11 = vld [vmem:[#allocation2] sm:$0xff]  ;;  %v82_v12 = vld [vmem:[#allocation2 + $0x108] sm:$0xff]  ;;  %v128_v18 = vld [vmem:[#allocation2 + $0x278] sm:$0xff]  ;;  %v194_v19 = vcombine.low %v177_v8, %v191_v9 }
  0x25   :  { %695 = vmatprep.subr.mxu1 %v102_v48  ;;  %662 = vmatprep.subr.mxu0 %v69_v47  ;;  %v97_v14 = vld [vmem:[#allocation2 + $0x180] sm:$0xff]  ;;  %v143_v20 = vld [vmem:[#allocation2 + $0x2f0] sm:$0xff]  ;;  %v142_v22 = vld [vmem:[#allocation2 + $0x2e8] sm:$0xff] }
  0x26   :  { %696 = vmatpush3.msra.mxu1 %v86_v50  ;;  %663 = vmatpush3.msra.mxu0 %v53_v49  ;;  %v81_v16 = vld [vmem:[#allocation2 + $0x100] sm:$0xff]  ;;  %v127_v21 = vld [vmem:[#allocation2 + $0x270] sm:$0xff]  ;;  %v126_v23 = vld [vmem:[#allocation2 + $0x268] sm:$0xff] }
  0x27   :  { %697 = vmatprep.subr.mxu1 %v101_v52  ;;  %664 = vmatprep.subr.mxu0 %v68_v54  ;;  %v864_v24 = vld [vmem:[%s1130_s0 + $0x8] ss:$12 sps:$4 sm:$0xff]   ;;  %v865_v25 = vld [vmem:[%s1130_s0 + $0x20] ss:$12 sps:$4 sm:$0xff]   ;;  %v140_v30 = vld [vmem:[#allocation2 + $0x2d8] sm:$0xff] }
  0x28   :  { %698 = vmatpush3.msra.mxu1 %v85_v55  ;;  %665 = vmatpush3.msra.mxu0 %v52_v57  ;;  %v141_v26 = vld [vmem:[#allocation2 + $0x2e0] sm:$0xff]  ;;  %v204_v28 = vrot.slane %v864_v24, %v962_v51  ;;  %v211_v29 = vrot.slane %v865_v25, %v962_v51  ;;  %v124_v31 = vld [vmem:[#allocation2 + $0x258] sm:$0xff]  ;;  %v139_v33 = vld [vmem:[#allocation2 + $0x2d0] sm:$0xff]  ;;  %v914_v57 = vmov 0.0  }
  0x29   :  { %699 = vmatprep.subr.mxu1 %v100_v58  ;;  %666 = vmatprep.subr.mxu0 %v67_v61  ;;  %v125_v27 = vld [vmem:[#allocation2 + $0x260] sm:$0xff]  ;;  %v123_v34 = vld [vmem:[#allocation2 + $0x250] sm:$0xff]  ;;  %v138_v35 = vld [vmem:[#allocation2 + $0x2c8] sm:$0xff] }
  0x2a   :  { %700 = vmatpush3.msra.mxu1 %v84_v62  ;;  %667 = vmatpush3.msra.mxu0 %v51_v1  ;;  %v213_v32 = vcombine.high %v204_v28, %v211_v29  ;;  %v122_v36 = vld [vmem:[#allocation2 + $0x248] sm:$0xff]  ;;  %v137_v37 = vld [vmem:[#allocation2 + $0x2c0] sm:$0xff]  ;;  %v136_v39 = vld [vmem:[#allocation2 + $0x2b8] sm:$0xff]  ;;  %v212_v55 = vcombine.low %v204_v28, %v211_v29 }
  0x2b   :  { %701 = vmatprep.subr.mxu1 %v99_v2  ;;  %668 = vmatprep.subr.mxu0 %v66_v3  ;;  %v121_v38 = vld [vmem:[#allocation2 + $0x240] sm:$0xff]  ;;  %v120_v40 = vld [vmem:[#allocation2 + $0x238] sm:$0xff]  ;;  %v135_v41 = vld [vmem:[#allocation2 + $0x2b0] sm:$0xff] }
  0x2c   :  { %702 = vmatpush3.msra.mxu1 %v83_v4  ;;  %669 = vmatpush3.msra.mxu0 %v50_v5  ;;  %v119_v42 = vld [vmem:[#allocation2 + $0x230] sm:$0xff]  ;;  %v134_v43 = vld [vmem:[#allocation2 + $0x2a8] sm:$0xff]  ;;  %v133_v45 = vld [vmem:[#allocation2 + $0x2a0] sm:$0xff] }
  0x2d   :  { %703 = vmatprep.subr.mxu1 %v98_v6  ;;  %670 = vmatprep.subr.mxu0 %v65_v10  ;;  %v118_v44 = vld [vmem:[#allocation2 + $0x228] sm:$0xff]  ;;  %v117_v46 = vld [vmem:[#allocation2 + $0x220] sm:$0xff]  ;;  %v132_v47 = vld [vmem:[#allocation2 + $0x298] sm:$0xff] }
  0x2e   :  { %284 = vmatprep.mubr.f32.mxu0 %v193_v7  ;;  %671 = vmatpush3.msra.mxu0 %v49_v11  ;;  %v116_v48 = vld [vmem:[#allocation2 + $0x218] sm:$0xff]  ;;  %v131_v49 = vld [vmem:[#allocation2 + $0x290] sm:$0xff]  ;;  %v130_v51 = vld [vmem:[#allocation2 + $0x288] sm:$0xff] }
  0x2f   :  { %704 = vmatpush3.msra.mxu1 %v82_v12  ;;  %285 = vmatmul.mubr.f32.vlgmr.msra.gmra.mxu0 %v192_v13  ;;  %v115_v50 = vld [vmem:[#allocation2 + $0x210] sm:$0xff]  ;;  %v114_v52 = vld [vmem:[#allocation2 + $0x208] sm:$0xff]  ;;  %v129_v53 = vld [vmem:[#allocation2 + $0x280] sm:$0xff] }
  0x30   :  { %705 = vmatprep.subr.mxu1 %v97_v14  ;;  %710 = vmatprep.subr.mxu0 %v144_v15  ;;  %v113_v54 = vld [vmem:[#allocation2 + $0x200] sm:$0xff]  ;;  %v446_v56 = vld [vmem:[%s1133_s3 + $0x78] sm:$0xff]  ;;  %v445_v58 = vld [vmem:[%s1133_s3 + $0x70] sm:$0xff] }
  0x31   :  { %706 = vmatpush3.msra.mxu1 %v81_v16  ;;  %354 = vmatprep.mubr.f32.mxu1 %v195_v17  ;;  %v444_v59 = vld [vmem:[%s1133_s3 + $0x68] sm:$0xff]  ;;  %v443_v60 = vld [vmem:[%s1133_s3 + $0x60] sm:$0xff]  ;;  %v442_v61 = vld [vmem:[%s1133_s3 + $0x58] sm:$0xff] }
  0x32   :  { %711 = vmatpush3.msra.mxu0 %v128_v18  ;;  %355 = vmatmul.mubr.f32.vlgmr.msra.gmra.mxu1 %v194_v19  ;;  %v441_v62 = vld [vmem:[%s1133_s3 + $0x50] sm:$0xff]  ;;  %v440_v63 = vld [vmem:[%s1133_s3 + $0x48] sm:$0xff]  ;;  %v439_v0 = vld [vmem:[%s1133_s3 + $0x40] sm:$0xff] }
  0x33   :  { %712 = vmatprep.subr.mxu0 %v143_v20  ;;  %424 = vmatprep.mubr.f32.mxu0 %v213_v32  ;;  %v438_v1 = vld [vmem:[%s1133_s3 + $0x38] sm:$0xff]  ;;  %v437_v2 = vld [vmem:[%s1133_s3 + $0x30] sm:$0xff]  ;;  %v436_v3 = vld [vmem:[%s1133_s3 + $0x28] sm:$0xff] }
  0x34   :  { %713 = vmatpush3.msra.mxu0 %v127_v21  ;;  %779 = vmatprep.subr.mxu1 %v914_v57  ;;  %v435_v4 = vld [vmem:[%s1133_s3 + $0x20] sm:$0xff]  ;;  %v434_v5 = vld [vmem:[%s1133_s3 + $0x18] sm:$0xff]  ;;  %v433_v6 = vld [vmem:[%s1133_s3 + $0x10] sm:$0xff] }
  0x35   :  { %714 = vmatprep.subr.mxu0 %v142_v22  ;;  %780 = vmatpush3.msra.mxu1 %v446_v56  ;;  %v432_v7 = vld [vmem:[%s1133_s3 + $0x8] sm:$0xff]  ;;  %v431_v8 = vld [vmem:[%s1133_s3] sm:$0xff]  ;;  %v540_v9 = vld [vmem:[%s1135_s5 + $0x78] sm:$0xff] }
  0x36   :  { %715 = vmatpush3.msra.mxu0 %v126_v23  ;;  %781 = vmatprep.subr.mxu1 %v914_v57  ;;  %v539_v10 = vld [vmem:[%s1135_s5 + $0x70] sm:$0xff]  ;;  %v538_v11 = vld [vmem:[%s1135_s5 + $0x68] sm:$0xff]  ;;  %v537_v12 = vld [vmem:[%s1135_s5 + $0x60] sm:$0xff] }
  0x37   :  { %716 = vmatprep.subr.mxu0 %v141_v26  ;;  %782 = vmatpush3.msra.mxu1 %v445_v58  ;;  %v536_v13 = vld [vmem:[%s1135_s5 + $0x58] sm:$0xff]  ;;  %v535_v14 = vld [vmem:[%s1135_s5 + $0x50] sm:$0xff]  ;;  %v534_v15 = vld [vmem:[%s1135_s5 + $0x48] sm:$0xff] }
  0x38   :  { %717 = vmatpush3.msra.mxu0 %v125_v27  ;;  %783 = vmatprep.subr.mxu1 %v914_v57  ;;  %v533_v16 = vld [vmem:[%s1135_s5 + $0x40] sm:$0xff]  ;;  %v532_v17 = vld [vmem:[%s1135_s5 + $0x38] sm:$0xff]  ;;  %v531_v18 = vld [vmem:[%s1135_s5 + $0x30] sm:$0xff] }
  0x39   :  { %718 = vmatprep.subr.mxu0 %v140_v30  ;;  %784 = vmatpush3.msra.mxu1 %v444_v59  ;;  %v530_v19 = vld [vmem:[%s1135_s5 + $0x28] sm:$0xff]  ;;  %v529_v20 = vld [vmem:[%s1135_s5 + $0x20] sm:$0xff]  ;;  %v528_v21 = vld [vmem:[%s1135_s5 + $0x18] sm:$0xff] }
  0x3a   :  { %719 = vmatpush3.msra.mxu0 %v124_v31  ;;  %785 = vmatprep.subr.mxu1 %v914_v57  ;;  %v637_v26 = vld [vmem:[%s1132_s2] ss:$0 sm:$0xff] }
  0x3b   :  { %720 = vmatprep.subr.mxu0 %v139_v33  ;;  %786 = vmatpush3.msra.mxu1 %v443_v60 }
  0x3c   :  { %721 = vmatpush3.msra.mxu0 %v123_v34  ;;  %787 = vmatprep.subr.mxu1 %v914_v57 }
  0x3d   :  { %722 = vmatprep.subr.mxu0 %v138_v35  ;;  %788 = vmatpush3.msra.mxu1 %v442_v61 }
  0x3e   :  { %723 = vmatpush3.msra.mxu0 %v122_v36  ;;  %789 = vmatprep.subr.mxu1 %v914_v57  ;;  %v527_v36 = vld [vmem:[%s1135_s5 + $0x10] sm:$0xff] }
  0x3f   :  { %724 = vmatprep.subr.mxu0 %v137_v37  ;;  %790 = vmatpush3.msra.mxu1 %v441_v62  ;;  %v526_v37 = vld [vmem:[%s1135_s5 + $0x8] sm:$0xff] }
  0x40   :  { %725 = vmatpush3.msra.mxu0 %v121_v38  ;;  %791 = vmatprep.subr.mxu1 %v914_v57  ;;  %v525_v38 = vld [vmem:[%s1135_s5] sm:$0xff] }
  0x41   :  { %726 = vmatprep.subr.mxu0 %v136_v39  ;;  %792 = vmatpush3.msra.mxu1 %v440_v63  ;;  %v638_v39 = vld [vmem:[%s1134_s4] ss:$0 sm:$0xff] }
  0x42   :  { %727 = vmatpush3.msra.mxu0 %v120_v40  ;;  %793 = vmatprep.subr.mxu1 %v914_v57 }
  0x43   :  { %728 = vmatprep.subr.mxu0 %v135_v41  ;;  %794 = vmatpush3.msra.mxu1 %v439_v0 }
  0x44   :  { %729 = vmatpush3.msra.mxu0 %v119_v42  ;;  %795 = vmatprep.subr.mxu1 %v914_v57 }
  0x45   :  { %730 = vmatprep.subr.mxu0 %v134_v43  ;;  %796 = vmatpush3.msra.mxu1 %v438_v1 }
  0x46   :  { %731 = vmatpush3.msra.mxu0 %v118_v44  ;;  %797 = vmatprep.subr.mxu1 %v914_v57  ;;  %v639_v44 = vld [vmem:[%s1136_s6] ss:$0 sm:$0xff] }
  0x47   :  { %732 = vmatprep.subr.mxu0 %v133_v45  ;;  %798 = vmatpush3.msra.mxu1 %v437_v2 }
  0x48   :  { %733 = vmatpush3.msra.mxu0 %v117_v46  ;;  %799 = vmatprep.subr.mxu1 %v914_v57 }
  0x49   :  { %734 = vmatprep.subr.mxu0 %v132_v47  ;;  %800 = vmatpush3.msra.mxu1 %v436_v3 }
  0x4a   :  { %735 = vmatpush3.msra.mxu0 %v116_v48  ;;  %801 = vmatprep.subr.mxu1 %v914_v57 }
  0x4b   :  { %736 = vmatprep.subr.mxu0 %v131_v49  ;;  %802 = vmatpush3.msra.mxu1 %v435_v4 }
  0x4c   :  { %737 = vmatpush3.msra.mxu0 %v115_v50  ;;  %803 = vmatprep.subr.mxu1 %v914_v57 }
  0x4d   :  { %738 = vmatprep.subr.mxu0 %v130_v51  ;;  %804 = vmatpush3.msra.mxu1 %v434_v5 }
  0x4e   :  { %739 = vmatpush3.msra.mxu0 %v114_v52  ;;  %805 = vmatprep.subr.mxu1 %v914_v57 }
  0x4f   :  { %740 = vmatprep.subr.mxu0 %v129_v53  ;;  %806 = vmatpush3.msra.mxu1 %v433_v6 }
  0x50   :  { %741 = vmatpush3.msra.mxu0 %v113_v54  ;;  %807 = vmatprep.subr.mxu1 %v914_v57 }
  0x51   :  { %425 = vmatmul.mubr.f32.vlgmr.msra.gmra.mxu0 %v212_v55  ;;  %814 = vmatprep.subr.mxu0 %v914_v57 }
  0x52   :  { %808 = vmatpush3.msra.mxu1 %v432_v7  ;;  %811 = vmatprep.mubr.msk.f32.mxu1 %vm915_vm0, %v914_v57 }
  0x53   :  { %809 = vmatprep.subr.mxu1 %v914_v57  ;;  %846 = vmatprep.mubr.msk.f32.mxu0 %vm915_vm0, %v914_v57 }
  0x54   :  { %810 = vmatpush3.msra.mxu1 %v431_v8  ;;  %815 = vmatpush3.msra.mxu0 %v540_v9 }
  0x55   :  { %816 = vmatprep.subr.mxu0 %v914_v57 }
  0x56   :  { %817 = vmatpush3.msra.mxu0 %v539_v10 }
  0x57   :  { %818 = vmatprep.subr.mxu0 %v914_v57 }
  0x58   :  { %819 = vmatpush3.msra.mxu0 %v538_v11 }
  0x59   :  { %820 = vmatprep.subr.mxu0 %v914_v57 }
  0x5a   :  { %821 = vmatpush3.msra.mxu0 %v537_v12 }
  0x5b   :  { %822 = vmatprep.subr.mxu0 %v914_v57 }
  0x5c   :  { %823 = vmatpush3.msra.mxu0 %v536_v13 }
  0x5d   :  { %824 = vmatprep.subr.mxu0 %v914_v57 }
  0x5e   :  { %825 = vmatpush3.msra.mxu0 %v535_v14 }
  0x5f   :  { %826 = vmatprep.subr.mxu0 %v914_v57 }
  0x60   :  { %827 = vmatpush3.msra.mxu0 %v534_v15 }
  0x61   :  { %828 = vmatprep.subr.mxu0 %v914_v57 }
  0x62   :  { %829 = vmatpush3.msra.mxu0 %v533_v16 }
  0x63   :  { %830 = vmatprep.subr.mxu0 %v914_v57 }
  0x64   :  { %831 = vmatpush3.msra.mxu0 %v532_v17 }
  0x65   :  { %832 = vmatprep.subr.mxu0 %v914_v57 }
  0x66   :  { %833 = vmatpush3.msra.mxu0 %v531_v18 }
  0x67   :  { %834 = vmatprep.subr.mxu0 %v914_v57 }
  0x68   :  { %835 = vmatpush3.msra.mxu0 %v530_v19 }
  0x69   :  { %836 = vmatprep.subr.mxu0 %v914_v57 }
  0x6a   :  { %837 = vmatpush3.msra.mxu0 %v529_v20 }
  0x6b   :  { %838 = vmatprep.subr.mxu0 %v914_v57 }
  0x6c   :  { %839 = vmatpush3.msra.mxu0 %v528_v21 }
  0x6d   :  { %840 = vmatprep.subr.mxu0 %v914_v57 }
  0x6e   :  { %841 = vmatpush3.msra.mxu0 %v527_v36 }
  0x6f   :  { %842 = vmatprep.subr.mxu0 %v914_v57 }
  0x70   :  { %843 = vmatpush3.msra.mxu0 %v526_v37 }
  0x71   :  { %844 = vmatprep.subr.mxu0 %v914_v57 }
  0x72   :  { %845 = vmatpush3.msra.mxu0 %v525_v38 }
  0xef   :  { %v672_v22 = vpop.f32.mrf.mxu0 }
  0xf1   :  { %v673_v23 = vpop.f32.mrf.mxu0 }
  0xf2   :  { %v707_v24 = vpop.f32.mrf.mxu1  ;;  %v674_v25 = vadd.f32 %v673_v23, %v672_v22 }
  0xf4   :  { %v708_v27 = vpop.f32.mrf.mxu1  ;;  %v287_v28 = vadd.f32 %v674_v25, %v637_v26 }
  0xf5   :  { %v709_v29 = vadd.f32 %v708_v27, %v707_v24 }
  0xf7   :  { %v357_v32 = vadd.f32 %v709_v29, %v287_v28 }
 0x111   :  { %v742_v30 = vpop.f32.mrf.mxu0 }
 0x113   :  { %v743_v31 = vpop.f32.mrf.mxu0 }
 0x114   :  { %v744_v33 = vadd.f32 %v743_v31, %v742_v30 }
 0x116   :  { %v427_v34 = vadd.f32 %v744_v33, %v357_v32 }
 0x118   :  { %v430_v35 = vmax.f32 %v427_v34, 0.0 }
 0x11a   :  { %812 = vmatmul.mubr.f32.vlgmr.msra.gmra.mxu1 %v430_v35 }
 0x1da   :  { %v520_v40 = vpop.f32.mrf.mxu1 }
 0x1db   :  { %v521_v41 = vadd.f32 %v638_v39, %v520_v40 }
 0x1dc   :  { %v813_v42 = vpop.f32.mrf.mxu1 }
 0x1dd   :  { %v524_v43 = vmax.f32 %v521_v41, 0.0 }
 0x1df   :  { %847 = vmatmul.mubr.f32.vlgmr.msra.gmra.mxu0 %v524_v43 }
 0x29f   :  { %v614_v45 = vpop.f32.mrf.mxu0 }
 0x2a0   :  { %v615_v46 = vadd.f32 %v639_v44, %v614_v45 }
 0x2a1   :  { %v848_v47 = vpop.f32.mrf.mxu0 }
 0x2a2   :  { %619 = vst.msk [vmem:[#allocation5] sm:$0xff] %vm618_vm1, %v615_v46 }
 0x2a3   :  { %624 = vsyncadd [#allocation4], 96  ;;  %s916_s5 = smov [#allocation5]  }
 0x2a4   :  { %s625_s11 = sshll.u32 %s916_s5, 4  ;;  %s626_s11 = int_to_ptr.vmem [resolvable:$true] %s625_s11 }
 0x2a5   :  { %s886_s12 = scalar_lea.vmem %s626_s11, 32  ;;  %s890_s4 = scalar_lea.vmem %s626_s11, 128 }
 0x2a6   :  { %p887_p5 = scmp.ne.s32.totalorder %s626_s11, %s886_s12  ;;  %p891_p6 = scmp.lt.s32.totalorder %s626_s11, %s626_s11 }
 0x2a7   :  { %p892_p7 = scmp.lt.s32.totalorder %s890_s4, %s886_s12 }
 0x2a9   :  { %p893_p8 = por %p892_p7, %p891_p6 }
 0x2ab   :  { %p894_p9 = pnand %p893_p8, %p887_p5 }
 0x2ad   :  { %897 = shalt.err (!%p894_p9)
}
 0x2ae   :  { %s917_s13 = smov 32   ;;  %s918_s14 = smov 2  }
 0x2af   :  { %631 = dma.vmem_to_hbm [thread:$0]  %s626_s11, 32, %s1137_s7, [#allocation4], %s917_s13, %s917_s13, %s918_s14  }
 0x2b0   :  { %908 = dma.done.wait [#allocation4], 128  }
 0x2b1   :  { %909 = vsyncadd [#allocation4], 4294967168 }
 0x2b2   :  { %635 = vsyncpa [#allocation3], 1 }
 0x2b3   :  { %636 = vsyncpa [#allocation4], 1 }

</bundles_post_ra>
